<compile_context>
chip_gen: v5e
topology: v5e:2x2
jax: 0.10.0
libtpu: 0.0.40
codegen_flags: <defaults>
</compile_context>

<pallas_src>
import jax
import jax.numpy as jnp
from jax import lax
from jax.experimental import pallas as pl
from jax.experimental.pallas import tpu as pltpu

EPS = 1e-5
_SUBLANE = 8  # f32 sublane tile height


def _round_up(x, m):
    return (x + m - 1) // m * m


def _layer_dims(x_dim, output_size, num_layers):
    """(in_dim, out_dim) of every matmul: encoder blocks then fc."""
    dims = []
    din = x_dim
    for _ in range(num_layers):
        dout = din // 2
        dims.append((din, dout))
        din = dout
    dims.append((din, output_size))
    return tuple(dims)


def _slab_layout(layer_dims):
    """Row layout of the single packed parameter slab.

      [ W_0   ] rows padded to an 8-row multiple   (8-aligned block starts)
      [ W_1   ]
      ...
      [ gammas ] one row per layer, group padded to an 8-row multiple
      [ betas  ] one row per layer, group padded to an 8-row multiple
    Columns padded to max_out.
    """
    n = len(layer_dims)
    max_out = max(d for _, d in layer_dims)
    w_offsets = []
    r = 0
    for din, _ in layer_dims:
        w_offsets.append(r)
        r += _round_up(din, _SUBLANE)
    gamma_base = r
    beta_base = gamma_base + _round_up(n, _SUBLANE)
    total_rows = beta_base + _round_up(n, _SUBLANE)
    return w_offsets, gamma_base, beta_base, total_rows, max_out


def pack_params(params, layer_dims):
    """Pack per-layer (W, b, gamma, beta) into ONE parameter slab.

    Call ONCE at init (outside the per-forward path); the forward takes the
    pre-packed slab, so no pad/concat XLA ops run per call.
    Linear biases are intentionally dropped: they cancel exactly under the
    training-mode BatchNorm that immediately follows each Linear.
    """
    w_offsets, gamma_base, beta_base, total_rows, max_out = _slab_layout(layer_dims)
    slab = jnp.zeros((total_rows, max_out), jnp.float32)
    idx = 0
    for li, (din, dout) in enumerate(layer_dims):
        w, _b, g, be = params[idx:idx + 4]
        idx += 4
        slab = slab.at[w_offsets[li]:w_offsets[li] + din, 0:dout].set(
            w.astype(jnp.float32))
        slab = slab.at[gamma_base + li, 0:dout].set(
            g.reshape(-1).astype(jnp.float32))
        slab = slab.at[beta_base + li, 0:dout].set(
            be.reshape(-1).astype(jnp.float32))
    return slab


def _make_kernel(layer_dims):
    n = len(layer_dims)
    w_offsets, gamma_base, beta_base, _, _ = _slab_layout(layer_dims)

    def kernel(x_ref, p_ref, out_ref):
        h = x_ref[...].astype(jnp.float32)
        for li, (din, dout) in enumerate(layer_dims):
            r0 = w_offsets[li]                              # 8-aligned by construction
            w = p_ref[r0:r0 + din, 0:dout]                  # static slice: free
            g = p_ref[gamma_base + li:gamma_base + li + 1, 0:dout]   # (1, dout)
            be = p_ref[beta_base + li:beta_base + li + 1, 0:dout]    # (1, dout)

            # Linear (bias dropped: cancels exactly under training-mode BN).
            # TODO(synk): for realistic widths, cast h/w to bf16 here (keep
            # preferred_element_type=f32); elementwise stays f32 (v5e VPU/EUP
            # have no bf16; v7x MXU is bf16/fp8 only -- no int8 weights).
            h = jnp.dot(h, w, preferred_element_type=jnp.float32)

            # Fused training-mode BatchNorm1d (biased variance, eps=1e-5):
            #   scale = gamma * rsqrt(var + eps), shift = beta - mean * scale
            mean = jnp.mean(h, axis=0, keepdims=True)
            mean_sq = jnp.mean(h * h, axis=0, keepdims=True)
            var = jnp.maximum(mean_sq - mean * mean, 0.0)   # clamp f32 cancellation
            scale = g * lax.rsqrt(var + EPS)                # EUP slot
            shift = be - mean * scale
            h = h * scale + shift                           # single VPU pass

            if li < n - 1:
                h = jnp.maximum(h, 0.0)                     # ReLU (not after final BN)

        out_ref[...] = h.astype(out_ref.dtype)

    return kernel


def feature_svdd_forward(x, param_slab, center, *, layer_dims):
    """x: (B, x_dim) f32. param_slab: pre-packed slab from pack_params().

    Returns (z, center), mirroring FeatureSVDD.forward.
    """
    batch, _ = x.shape
    output_size = layer_dims[-1][1]

    flops = 2 * batch * sum(a * b for a, b in layer_dims)
    transcendentals = sum(b for _, b in layer_dims)          # one rsqrt per feature
    bytes_accessed = 4 * (x.size + param_slab.size + batch * output_size)

    vmem_spec = pl.BlockSpec(memory_space=pltpu.MemorySpace.VMEM)
    z = pl.pallas_call(
        _make_kernel(layer_dims),
        out_shape=jax.ShapeDtypeStruct((batch, output_size), jnp.float32),
        in_specs=[vmem_spec, vmem_spec],                     # 2 input DMAs total
        out_specs=vmem_spec,
        cost_estimate=pl.CostEstimate(
            flops=flops,
            transcendentals=transcendentals,
            bytes_accessed=bytes_accessed,
        ),
        compiler_params=pltpu.CompilerParams(vmem_limit_bytes=16 * 1024 * 1024),
    )(x, param_slab)
    return z, center


def init_params(key, x_dim, output_size, num_layers):
    """Parameter init mimicking the PyTorch module's shapes (biases included)."""
    params = []
    in_dim = x_dim
    keys = jax.random.split(key, 2 * (num_layers + 1) + 1)
    ki = 0
    for _ in range(num_layers):
        out_dim = in_dim // 2
        bound = 1.0 / jnp.sqrt(in_dim)
        w = jax.random.uniform(keys[ki], (in_dim, out_dim), jnp.float32, -bound, bound)
        b = jax.random.uniform(keys[ki + 1], (1, out_dim), jnp.float32, -bound, bound)
        ki += 2
        gamma = jnp.ones((1, out_dim), jnp.float32)          # BatchNorm1d affine defaults
        beta = jnp.zeros((1, out_dim), jnp.float32)
        params += [w, b, gamma, beta]
        in_dim = out_dim
    bound = 1.0 / jnp.sqrt(in_dim)
    w = jax.random.uniform(keys[ki], (in_dim, output_size), jnp.float32, -bound, bound)
    b = jax.random.uniform(keys[ki + 1], (1, output_size), jnp.float32, -bound, bound)
    gamma = jax.random.uniform(keys[ki + 2], (1, output_size), jnp.float32, 0.0, 1.0)
    beta = jnp.zeros((1, output_size), jnp.float32)
    params += [w, b, gamma, beta]
    return params


def reference_forward(x, params, num_layers):
    """Independent plain-JAX golden: full PyTorch semantics (Linear WITH bias,
    unfused training-mode BatchNorm1d: biased var, eps=1e-5, 1/sqrt)."""
    h = x
    idx = 0
    for li in range(num_layers + 1):
        w, b, g, be = params[idx:idx + 4]
        idx += 4
        h = h @ w + b
        mean = jnp.mean(h, axis=0, keepdims=True)
        var = jnp.mean((h - mean) ** 2, axis=0, keepdims=True)
        h = (h - mean) / jnp.sqrt(var + EPS) * g + be
        if li < num_layers:
            h = jnp.maximum(h, 0.0)
    return h


if __name__ == "__main__":
    # config: x_dim=32, output_size=8, layers=2, bn_affine=True
    batch, x_dim, output_size, num_layers = 8, 32, 8, 2

    key = jax.random.PRNGKey(0)
    kx, kp, kc = jax.random.split(key, 3)
    x = jax.random.normal(kx, (batch, x_dim), jnp.float32)
    params = init_params(kp, x_dim, output_size, num_layers)
    center = jax.random.normal(kc, (output_size,), jnp.float32)  # nn.Parameter, normal init

    layer_dims = _layer_dims(x_dim, output_size, num_layers)
    # Pack ONCE at init (hoisted out of the per-call path).
    param_slab = jax.block_until_ready(pack_params(params, layer_dims))

    z, c = feature_svdd_forward(x, param_slab, center, layer_dims=layer_dims)
    z = jax.block_until_ready(z)
    c = jax.block_until_ready(c)

    z_ref = reference_forward(x, params, num_layers)
    assert jnp.allclose(z, z_ref, atol=1e-4, rtol=1e-4), "mismatch vs reference"
    assert z.shape == (batch, output_size)
    assert c.shape == (output_size,)

    print("KERNEL_OK")
</pallas_src>

<mosaic_0001>
module attributes {stable_mosaic.version = 11 : i64} {
  func.func @kernel(%arg0: memref<8x32xf32, #tpu.memory_space<vmem>>, %arg1: memref<72x16xf32, #tpu.memory_space<vmem>>, %arg2: memref<8x8xf32, #tpu.memory_space<vmem>>) attributes {dimension_semantics = [], scalar_prefetch = 0 : i64, scratch_operands = 0 : i64, tpu.core_type = #tpu.core_type<tc>} {
    %c0 = arith.constant 0 : index
    %c0_0 = arith.constant 0 : index
    %0 = vector.load %arg0[%c0, %c0_0] : memref<8x32xf32, #tpu.memory_space<vmem>>, vector<8x32xf32>
    %c0_1 = arith.constant 0 : index
    %c0_2 = arith.constant 0 : index
    %1 = vector.load %arg1[%c0_1, %c0_2] : memref<72x16xf32, #tpu.memory_space<vmem>>, vector<32x16xf32>
    %c56 = arith.constant 56 : index
    %c0_3 = arith.constant 0 : index
    %2 = vector.load %arg1[%c56, %c0_3] : memref<72x16xf32, #tpu.memory_space<vmem>>, vector<1x16xf32>
    %c64 = arith.constant 64 : index
    %c0_4 = arith.constant 0 : index
    %3 = vector.load %arg1[%c64, %c0_4] : memref<72x16xf32, #tpu.memory_space<vmem>>, vector<1x16xf32>
    %cst = arith.constant dense<0.000000e+00> : vector<8x16xf32>
    %4 = tpu.matmul %0, %1, %cst {dimension_numbers = #tpu.dot_dimension_numbers<[1], [0], [0], [1], [0, 0, 1, 1], [], []>} : vector<8x32xf32>, vector<32x16xf32>, vector<8x16xf32> -> vector<8x16xf32>
    %cst_5 = arith.constant dense<0.000000e+00> : vector<16xf32>
    %5 = vector.multi_reduction <add>, %4, %cst_5 [0] : vector<8x16xf32> to vector<16xf32>
    %6 = vector.shape_cast %5 : vector<16xf32> to vector<1x16xf32>
    %cst_6 = arith.constant 8.000000e+00 : f32
    %7 = vector.broadcast %cst_6 : f32 to vector<1x16xf32>
    %8 = arith.divf %6, %7 : vector<1x16xf32>
    %9 = arith.mulf %4, %4 : vector<8x16xf32>
    %cst_7 = arith.constant dense<0.000000e+00> : vector<16xf32>
    %10 = vector.multi_reduction <add>, %9, %cst_7 [0] : vector<8x16xf32> to vector<16xf32>
    %11 = vector.shape_cast %10 : vector<16xf32> to vector<1x16xf32>
    %cst_8 = arith.constant 8.000000e+00 : f32
    %12 = vector.broadcast %cst_8 : f32 to vector<1x16xf32>
    %13 = arith.divf %11, %12 : vector<1x16xf32>
    %14 = arith.mulf %8, %8 : vector<1x16xf32>
    %15 = arith.subf %13, %14 : vector<1x16xf32>
    %cst_9 = arith.constant 0.000000e+00 : f32
    %16 = vector.broadcast %cst_9 : f32 to vector<1x16xf32>
    %17 = arith.maximumf %15, %16 : vector<1x16xf32>
    %cst_10 = arith.constant 9.99999974E-6 : f32
    %18 = vector.broadcast %cst_10 : f32 to vector<1x16xf32>
    %19 = arith.addf %17, %18 : vector<1x16xf32>
    %20 = math.rsqrt %19 : vector<1x16xf32>
    %21 = arith.mulf %2, %20 : vector<1x16xf32>
    %22 = arith.mulf %8, %21 : vector<1x16xf32>
    %23 = arith.subf %3, %22 : vector<1x16xf32>
    %24 = vector.broadcast %21 : vector<1x16xf32> to vector<8x16xf32>
    %25 = arith.mulf %4, %24 : vector<8x16xf32>
    %26 = vector.broadcast %23 : vector<1x16xf32> to vector<8x16xf32>
    %27 = arith.addf %25, %26 : vector<8x16xf32>
    %cst_11 = arith.constant 0.000000e+00 : f32
    %28 = vector.broadcast %cst_11 : f32 to vector<8x16xf32>
    %29 = arith.maximumf %27, %28 : vector<8x16xf32>
    %c32 = arith.constant 32 : index
    %c0_12 = arith.constant 0 : index
    %30 = vector.load %arg1[%c32, %c0_12] : memref<72x16xf32, #tpu.memory_space<vmem>>, vector<16x8xf32>
    %c57 = arith.constant 57 : index
    %c0_13 = arith.constant 0 : index
    %31 = vector.load %arg1[%c57, %c0_13] : memref<72x16xf32, #tpu.memory_space<vmem>>, vector<1x8xf32>
    %c65 = arith.constant 65 : index
    %c0_14 = arith.constant 0 : index
    %32 = vector.load %arg1[%c65, %c0_14] : memref<72x16xf32, #tpu.memory_space<vmem>>, vector<1x8xf32>
    %cst_15 = arith.constant dense<0.000000e+00> : vector<8x8xf32>
    %33 = tpu.matmul %29, %30, %cst_15 {dimension_numbers = #tpu.dot_dimension_numbers<[1], [0], [0], [1], [0, 0, 1, 1], [], []>} : vector<8x16xf32>, vector<16x8xf32>, vector<8x8xf32> -> vector<8x8xf32>
    %cst_16 = arith.constant dense<0.000000e+00> : vector<8xf32>
    %34 = vector.multi_reduction <add>, %33, %cst_16 [0] : vector<8x8xf32> to vector<8xf32>
    %35 = vector.shape_cast %34 : vector<8xf32> to vector<1x8xf32>
    %cst_17 = arith.constant 8.000000e+00 : f32
    %36 = vector.broadcast %cst_17 : f32 to vector<1x8xf32>
    %37 = arith.divf %35, %36 : vector<1x8xf32>
    %38 = arith.mulf %33, %33 : vector<8x8xf32>
    %cst_18 = arith.constant dense<0.000000e+00> : vector<8xf32>
    %39 = vector.multi_reduction <add>, %38, %cst_18 [0] : vector<8x8xf32> to vector<8xf32>
    %40 = vector.shape_cast %39 : vector<8xf32> to vector<1x8xf32>
    %cst_19 = arith.constant 8.000000e+00 : f32
    %41 = vector.broadcast %cst_19 : f32 to vector<1x8xf32>
    %42 = arith.divf %40, %41 : vector<1x8xf32>
    %43 = arith.mulf %37, %37 : vector<1x8xf32>
    %44 = arith.subf %42, %43 : vector<1x8xf32>
    %cst_20 = arith.constant 0.000000e+00 : f32
    %45 = vector.broadcast %cst_20 : f32 to vector<1x8xf32>
    %46 = arith.maximumf %44, %45 : vector<1x8xf32>
    %cst_21 = arith.constant 9.99999974E-6 : f32
    %47 = vector.broadcast %cst_21 : f32 to vector<1x8xf32>
    %48 = arith.addf %46, %47 : vector<1x8xf32>
    %49 = math.rsqrt %48 : vector<1x8xf32>
    %50 = arith.mulf %31, %49 : vector<1x8xf32>
    %51 = arith.mulf %37, %50 : vector<1x8xf32>
    %52 = arith.subf %32, %51 : vector<1x8xf32>
    %53 = vector.broadcast %50 : vector<1x8xf32> to vector<8x8xf32>
    %54 = arith.mulf %33, %53 : vector<8x8xf32>
    %55 = vector.broadcast %52 : vector<1x8xf32> to vector<8x8xf32>
    %56 = arith.addf %54, %55 : vector<8x8xf32>
    %cst_22 = arith.constant 0.000000e+00 : f32
    %57 = vector.broadcast %cst_22 : f32 to vector<8x8xf32>
    %58 = arith.maximumf %56, %57 : vector<8x8xf32>
    %c48 = arith.constant 48 : index
    %c0_23 = arith.constant 0 : index
    %59 = vector.load %arg1[%c48, %c0_23] : memref<72x16xf32, #tpu.memory_space<vmem>>, vector<8x8xf32>
    %c58 = arith.constant 58 : index
    %c0_24 = arith.constant 0 : index
    %60 = vector.load %arg1[%c58, %c0_24] : memref<72x16xf32, #tpu.memory_space<vmem>>, vector<1x8xf32>
    %c66 = arith.constant 66 : index
    %c0_25 = arith.constant 0 : index
    %61 = vector.load %arg1[%c66, %c0_25] : memref<72x16xf32, #tpu.memory_space<vmem>>, vector<1x8xf32>
    %cst_26 = arith.constant dense<0.000000e+00> : vector<8x8xf32>
    %62 = tpu.matmul %58, %59, %cst_26 {dimension_numbers = #tpu.dot_dimension_numbers<[1], [0], [0], [1], [0, 0, 1, 1], [], []>} : vector<8x8xf32>, vector<8x8xf32>, vector<8x8xf32> -> vector<8x8xf32>
    %cst_27 = arith.constant dense<0.000000e+00> : vector<8xf32>
    %63 = vector.multi_reduction <add>, %62, %cst_27 [0] : vector<8x8xf32> to vector<8xf32>
    %64 = vector.shape_cast %63 : vector<8xf32> to vector<1x8xf32>
    %cst_28 = arith.constant 8.000000e+00 : f32
    %65 = vector.broadcast %cst_28 : f32 to vector<1x8xf32>
    %66 = arith.divf %64, %65 : vector<1x8xf32>
    %67 = arith.mulf %62, %62 : vector<8x8xf32>
    %cst_29 = arith.constant dense<0.000000e+00> : vector<8xf32>
    %68 = vector.multi_reduction <add>, %67, %cst_29 [0] : vector<8x8xf32> to vector<8xf32>
    %69 = vector.shape_cast %68 : vector<8xf32> to vector<1x8xf32>
    %cst_30 = arith.constant 8.000000e+00 : f32
    %70 = vector.broadcast %cst_30 : f32 to vector<1x8xf32>
    %71 = arith.divf %69, %70 : vector<1x8xf32>
    %72 = arith.mulf %66, %66 : vector<1x8xf32>
    %73 = arith.subf %71, %72 : vector<1x8xf32>
    %cst_31 = arith.constant 0.000000e+00 : f32
    %74 = vector.broadcast %cst_31 : f32 to vector<1x8xf32>
    %75 = arith.maximumf %73, %74 : vector<1x8xf32>
    %cst_32 = arith.constant 9.99999974E-6 : f32
    %76 = vector.broadcast %cst_32 : f32 to vector<1x8xf32>
    %77 = arith.addf %75, %76 : vector<1x8xf32>
    %78 = math.rsqrt %77 : vector<1x8xf32>
    %79 = arith.mulf %60, %78 : vector<1x8xf32>
    %80 = arith.mulf %66, %79 : vector<1x8xf32>
    %81 = arith.subf %61, %80 : vector<1x8xf32>
    %82 = vector.broadcast %79 : vector<1x8xf32> to vector<8x8xf32>
    %83 = arith.mulf %62, %82 : vector<8x8xf32>
    %84 = vector.broadcast %81 : vector<1x8xf32> to vector<8x8xf32>
    %85 = arith.addf %83, %84 : vector<8x8xf32>
    %c0_33 = arith.constant 0 : index
    %c0_34 = arith.constant 0 : index
    %86 = vector.load %arg2[%c0_33, %c0_34] : memref<8x8xf32, #tpu.memory_space<vmem>>, vector<8x8xf32>
    tpu.vector_store %arg2[%c0_33, %c0_34], %85 {strides = array<i32>} : memref<8x8xf32, #tpu.memory_space<vmem>>, vector<8x8xf32>,
    return
  }
}

</mosaic_0001>

<bundles_post_ra>
// kernel: tpu_custom_call.1
= control target key start
LH: loop header
LB: loop body
LE: loop exit
PB: predicated region body
PF: predicated region fallthrough
CT: control target
= control target key end

     0   :  { %s356_s0 = inlined_call_operand.vmem [shape: f32[8,32], index: 0, kind: input, shape index: {}]   ;;  %s357_s1 = inlined_call_operand.vmem [shape: f32[72,16], index: 1, kind: input, shape index: {}]   ;;  %s358_s2 = inlined_call_operand.hbm [shape: f32[8,8], index: 2, kind: output, shape index: {}]  }
   0x1   :  { %v16_v0 = vld [vmem:[%s357_s1 + $0x18] sm:$0xff]  ;;  %v15_v1 = vld [vmem:[%s357_s1 + $0x10] sm:$0xff]  ;;  %v14_v2 = vld [vmem:[%s357_s1 + $0x8] sm:$0xff] }
   0x2   :  { %35 = vmatpush.msra.mxu0 %v16_v0 }
   0x3   :  { %7 = vsyncpa [#allocation3], 0  ;;  %v13_v3 = vld [vmem:[%s357_s1] sm:$0xff]  ;;  %vm19_vm0 = vcmask 261120   ;;  %v277_v5 = vmov 8.0   ;;  %vm43_vm1 = vcmask 130048  }
   0x4   :  { %36 = vmatpush.msra.mxu0 %v15_v1  ;;  %v12_v4 = vld [vmem:[%s356_s0] sm:$0xff]  ;;  %243 = vrcp.f32 %v277_v5  ;;  %v91_v32 = vld [vmem:[%s357_s1 + $0x28] sm:$0xff]  ;;  %v17_v41 = vld [vmem:[%s357_s1 + $0x38] sm:$0x1]  ;;  %vm117_vm6 = vcmask 64512   ;;  %s278_s8 = smov [#allocation2]  }
   0x5   :  { %v90_v33 = vld [vmem:[%s357_s1 + $0x20] sm:$0xff]  ;;  %111 = vmatpush.msra.mxu1 %v91_v32  ;;  %s227_s9 = sshll.u32 %s278_s8, 4  ;;  %s229_s12 = sshll.u32 %s358_s2, 4  ;;  %s228_s9 = int_to_ptr.vmem [resolvable:$true] %s227_s9  ;;  %s230_s12 = int_to_ptr.hbm [resolvable:$true] %s229_s12 }
   0x6   :  { %37 = vmatpush.msra.mxu0 %v14_v2  ;;  %v18_v45 = vld [vmem:[%s357_s1 + $0x40] sm:$0x1] }
   0x7   :  { %112 = vmatpush.msra.mxu1 %v90_v33 }
   0x8   :  { %38 = vmatpush.msra.mxu0 %v13_v3 }
   0x9   :  { %238 = vmatmul.msk.f32.vlgmr.msra.gmra.mxu0 %vm19_vm0, %v12_v4 }
   0xa   :  { %v244_v6 = vpop.eup %243 }
   0xb   :  { %v52_v7 = vmul.f32 8.0, %v244_v6  ;;  %vm56_vm2 = vweird.f32 %v244_v6 }
   0xd   :  { %v53_v8 = vsub.f32 1.0, %v52_v7 }
   0xf   :  { %v54_v13 = vmul.f32 %v244_v6, %v53_v8 }
  0x11   :  { %v55_v19 = vadd.f32 %v244_v6, %v54_v13 }
  0x13   :  { %v311_v24 = vsel %vm56_vm2, %v244_v6, %v55_v19 }
  0x86   :  { %v40_v9 = vpop.f32.mrf.mxu0 }
  0x87   :  { %v44_v10 = vsel %vm43_vm1, %v40_v9, 0.0  ;;  %v59_v11 = vmul.f32 %v40_v9, %v40_v9 }
  0x88   :  { %v45_v12 = vrot.slane %v44_v10, 4 }
  0x89   :  { %v60_v14 = vsel %vm43_vm1, %v59_v11, 0.0 }
  0x8a   :  { %v46_v15 = vadd.f32 %v45_v12, %v44_v10  ;;  %v61_v16 = vrot.slane %v60_v14, 4 }
  0x8c   :  { %v47_v17 = vrot.slane %v46_v15, 2  ;;  %v62_v18 = vadd.f32 %v61_v16, %v60_v14 }
  0x8e   :  { %v48_v20 = vadd.f32 %v47_v17, %v46_v15  ;;  %v63_v21 = vrot.slane %v62_v18, 2  ;;  %v92_v17 = vld [vmem:[%s357_s1 + $0x39] sm:$0x1] }
  0x90   :  { %v49_v22 = vrot.slane %v48_v20, 1  ;;  %v64_v23 = vadd.f32 %v63_v21, %v62_v18  ;;  %v93_v21 = vld [vmem:[%s357_s1 + $0x41] sm:$0x1] }
  0x92   :  { %v50_v25 = vadd.f32 %v49_v22, %v48_v20  ;;  %v65_v26 = vrot.slane %v64_v23, 1 }
  0x94   :  { %v58_v27 = vmul.f32 %v311_v24, %v50_v25  ;;  %v66_v28 = vadd.f32 %v65_v26, %v64_v23 }
  0x96   :  { %v67_v29 = vmul.f32 %v66_v28, %v311_v24  ;;  %v68_v30 = vmul.f32 %v58_v27, %v58_v27 }
  0x98   :  { %v69_v31 = vsub.f32 %v67_v29, %v68_v30 }
  0x9a   :  { %v70_v34 = vmax.f32 %v69_v31, 0.0 }
  0x9c   :  { %v71_v35 = vadd.f32 1e-05, %v70_v34 }
  0x9e   :  { %245 = vrsqrt.f32 %v71_v35  ;;  %vm78_vm4 = vweird.f32 %v71_v35 }
  0xa4   :  { %v246_v36 = vpop.eup %245 }
  0xa5   :  { %v73_v37 = vmul.f32 %v246_v36, %v71_v35  ;;  %vm79_vm3 = vweird.f32 %v246_v36 }
  0xa6   :  { %vm80_vm5 = vmor %vm78_vm4, %vm79_vm3 }
  0xa7   :  { %v74_v38 = vmul.f32 %v246_v36, %v73_v37 }
  0xa9   :  { %v75_v39 = vmul.f32 0.5, %v74_v38 }
  0xab   :  { %v76_v40 = vsub.f32 1.5, %v75_v39 }
  0xad   :  { %v77_v42 = vmul.f32 %v246_v36, %v76_v40 }
  0xaf   :  { %v81_v43 = vsel %vm80_vm5, %v246_v36, %v77_v42 }
  0xb0   :  { %v82_v44 = vmul.f32 %v81_v43, %v17_v41 }
  0xb2   :  { %v83_v46 = vmul.f32 %v82_v44, %v58_v27  ;;  %v85_v47 = vperm.slane %v82_v44, 0 }
  0xb4   :  { %v84_v48 = vsub.f32 %v18_v45, %v83_v46  ;;  %v86_v49 = vmul.f32 %v85_v47, %v40_v9  ;;  %v157_v9 = vld [vmem:[%s357_s1 + $0x30] sm:$0xff] }
  0xb5   :  { %178 = vmatpush.msra.mxu2 %v157_v9 }
  0xb6   :  { %v87_v50 = vperm.slane %v84_v48, 0 }
  0xb8   :  { %v88_v51 = vadd.f32 %v87_v50, %v86_v49 }
  0xba   :  { %v89_v52 = vmax.f32 %v88_v51, 0.0 }
  0xbc   :  { %239 = vmatmul.msk.f32.vlgmr.msra.gmra.mxu1 %vm43_vm1, %v89_v52 }
 0x139   :  { %v114_v53 = vpop.f32.mrf.mxu1 }
 0x13a   :  { %v118_v54 = vsel %vm117_vm6, %v114_v53, 0.0  ;;  %v126_v55 = vmul.f32 %v114_v53, %v114_v53 }
 0x13b   :  { %v119_v56 = vrot.slane %v118_v54, 4 }
 0x13c   :  { %v127_v57 = vsel %vm117_vm6, %v126_v55, 0.0 }
 0x13d   :  { %v120_v58 = vadd.f32 %v119_v56, %v118_v54  ;;  %v128_v59 = vrot.slane %v127_v57, 4 }
 0x13f   :  { %v121_v60 = vrot.slane %v120_v58, 2  ;;  %v129_v61 = vadd.f32 %v128_v59, %v127_v57  ;;  %v158_v57 = vld [vmem:[%s357_s1 + $0x3a] sm:$0x1] }
 0x141   :  { %v122_v62 = vadd.f32 %v121_v60, %v120_v58  ;;  %v130_v63 = vrot.slane %v129_v61, 2  ;;  %v159_v60 = vld [vmem:[%s357_s1 + $0x42] sm:$0x1] }
 0x143   :  { %v123_v0 = vrot.slane %v122_v62, 1  ;;  %v131_v1 = vadd.f32 %v130_v63, %v129_v61 }
 0x145   :  { %v124_v2 = vadd.f32 %v123_v0, %v122_v62  ;;  %v132_v3 = vrot.slane %v131_v1, 1 }
 0x147   :  { %v125_v4 = vmul.f32 %v124_v2, %v311_v24  ;;  %v133_v5 = vadd.f32 %v132_v3, %v131_v1 }
 0x149   :  { %v134_v6 = vmul.f32 %v133_v5, %v311_v24  ;;  %v135_v7 = vmul.f32 %v125_v4, %v125_v4 }
 0x14b   :  { %v136_v8 = vsub.f32 %v134_v6, %v135_v7 }
 0x14d   :  { %v137_v10 = vmax.f32 %v136_v8, 0.0 }
 0x14f   :  { %v138_v11 = vadd.f32 1e-05, %v137_v10 }
 0x151   :  { %247 = vrsqrt.f32 %v138_v11  ;;  %vm145_vm8 = vweird.f32 %v138_v11 }
 0x157   :  { %v248_v12 = vpop.eup %247 }
 0x158   :  { %v140_v13 = vmul.f32 %v248_v12, %v138_v11  ;;  %vm146_vm7 = vweird.f32 %v248_v12 }
 0x159   :  { %vm147_vm9 = vmor %vm145_vm8, %vm146_vm7 }
 0x15a   :  { %v141_v14 = vmul.f32 %v248_v12, %v140_v13 }
 0x15c   :  { %v142_v15 = vmul.f32 0.5, %v141_v14 }
 0x15e   :  { %v143_v16 = vsub.f32 1.5, %v142_v15 }
 0x160   :  { %v144_v18 = vmul.f32 %v248_v12, %v143_v16 }
 0x162   :  { %v148_v19 = vsel %vm147_vm9, %v248_v12, %v144_v18 }
 0x163   :  { %v149_v20 = vmul.f32 %v148_v19, %v92_v17 }
 0x165   :  { %v150_v22 = vmul.f32 %v149_v20, %v125_v4  ;;  %v152_v23 = vperm.slane %v149_v20, 0 }
 0x167   :  { %v151_v25 = vsub.f32 %v93_v21, %v150_v22  ;;  %v153_v26 = vmul.f32 %v152_v23, %v114_v53 }
 0x169   :  { %v154_v27 = vperm.slane %v151_v25, 0 }
 0x16b   :  { %v155_v28 = vadd.f32 %v154_v27, %v153_v26 }
 0x16d   :  { %v156_v29 = vmax.f32 %v155_v28, 0.0 }
 0x16f   :  { %240 = vmatmul.msk.f32.vlgmr.msra.gmra.mxu2 %vm117_vm6, %v156_v29 }
 0x1f2   :  { %v180_v30 = vpop.f32.mrf.mxu2 }
 0x1f3   :  { %v183_v31 = vsel %vm117_vm6, %v180_v30, 0.0  ;;  %v191_v32 = vmul.f32 %v180_v30, %v180_v30 }
 0x1f4   :  { %v184_v33 = vrot.slane %v183_v31, 4 }
 0x1f5   :  { %v192_v34 = vsel %vm117_vm6, %v191_v32, 0.0 }
 0x1f6   :  { %v185_v35 = vadd.f32 %v184_v33, %v183_v31  ;;  %v193_v36 = vrot.slane %v192_v34, 4 }
 0x1f8   :  { %v186_v37 = vrot.slane %v185_v35, 2  ;;  %v194_v38 = vadd.f32 %v193_v36, %v192_v34 }
 0x1fa   :  { %v187_v39 = vadd.f32 %v186_v37, %v185_v35  ;;  %v195_v40 = vrot.slane %v194_v38, 2 }
 0x1fc   :  { %v188_v41 = vrot.slane %v187_v39, 1  ;;  %v196_v42 = vadd.f32 %v195_v40, %v194_v38 }
 0x1fe   :  { %v189_v43 = vadd.f32 %v188_v41, %v187_v39  ;;  %v197_v44 = vrot.slane %v196_v42, 1 }
 0x200   :  { %v190_v45 = vmul.f32 %v189_v43, %v311_v24  ;;  %v198_v46 = vadd.f32 %v197_v44, %v196_v42 }
 0x202   :  { %v199_v47 = vmul.f32 %v198_v46, %v311_v24  ;;  %v200_v48 = vmul.f32 %v190_v45, %v190_v45 }
 0x204   :  { %v201_v49 = vsub.f32 %v199_v47, %v200_v48 }
 0x206   :  { %v202_v50 = vmax.f32 %v201_v49, 0.0 }
 0x208   :  { %v203_v51 = vadd.f32 1e-05, %v202_v50 }
 0x20a   :  { %249 = vrsqrt.f32 %v203_v51  ;;  %vm210_vm11 = vweird.f32 %v203_v51 }
 0x210   :  { %v250_v52 = vpop.eup %249 }
 0x211   :  { %v205_v53 = vmul.f32 %v250_v52, %v203_v51  ;;  %vm211_vm10 = vweird.f32 %v250_v52 }
 0x212   :  { %vm212_vm12 = vmor %vm210_vm11, %vm211_vm10 }
 0x213   :  { %v206_v54 = vmul.f32 %v250_v52, %v205_v53 }
 0x215   :  { %v207_v55 = vmul.f32 0.5, %v206_v54 }
 0x217   :  { %v208_v56 = vsub.f32 1.5, %v207_v55 }
 0x219   :  { %v209_v58 = vmul.f32 %v250_v52, %v208_v56 }
 0x21b   :  { %v213_v59 = vsel %vm212_vm12, %v250_v52, %v209_v58 }
 0x21c   :  { %v214_v24 = vmul.f32 %v213_v59, %v158_v57 }
 0x21e   :  { %v215_v61 = vmul.f32 %v214_v24, %v190_v45  ;;  %v217_v62 = vperm.slane %v214_v24, 0 }
 0x220   :  { %v216_v63 = vsub.f32 %v159_v60, %v215_v61  ;;  %v218_v0 = vmul.f32 %v217_v62, %v180_v30 }
 0x222   :  { %v219_v1 = vperm.slane %v216_v63, 0 }
 0x224   :  { %v220_v2 = vadd.f32 %v219_v1, %v218_v0 }
 0x226   :  { %221 = vst.msk [vmem:[#allocation2] sm:$0xff] %vm117_vm6, %v220_v2 }
 0x227   :  { %232 = dma.vmem_to_hbm [thread:$0]  %s228_s9, 128, %s230_s12, [#allocation3]  }
 0x228   :  { %275 = dma.done.wait [#allocation3], 128  }
 0x229   :  { %276 = vsyncadd [#allocation3], 4294967168 }
 0x22a   :  { %237 = vsyncpa [#allocation3], 1 }

</bundles_post_ra>
